<compile_context>
chip_gen: v5e
topology: v5e:2x2
jax: 0.10.0
libtpu: 0.0.40
codegen_flags: <defaults>
</compile_context>

<pallas_src>
import functools

import jax
import jax.numpy as jnp
from jax.experimental import pallas as pl
from jax.experimental.pallas import tpu as pltpu


def convblock_kernel(x_ref, wb1_ref, b1_ref, wb2_ref, b2_ref, out_ref, *, bt, H):
    """ConvBlock forward for `bt` images stacked along rows.

    x_ref  : (bt*(H+4), W*Cin)    bf16; per image: 2 zero halo rows, H image
                                  rows, 2 zero halo rows.
    wb1_ref: (3, W*Cin, W*Cout)   bf16 banded conv1 weight (one band per ky)
    b1_ref : (1, W*Cout)          f32  conv1 bias tiled over W
    wb2_ref: (3, W*Cout, W*Cout)  bf16 banded conv2 weight
    b2_ref : (1, W*Cout)          f32  conv2 bias tiled over W
    out_ref: (bt*H, W*Cout)       f32  output rows (lane-dense)
    """
    P = H + 4
    R = bt * P

    x = x_ref[...]                                            # (R, W*Cin) bf16

    # conv1: 3 row-shifted banded GEMMs; acc1[i] is the conv1 output whose
    # centre sits on x row c1 = i + 1.
    acc1 = jnp.dot(x[0:R - 2], wb1_ref[0], preferred_element_type=jnp.float32)
    acc1 = acc1 + jnp.dot(x[1:R - 1], wb1_ref[1],
                          preferred_element_type=jnp.float32)
    acc1 = acc1 + jnp.dot(x[2:R], wb1_ref[2],
                          preferred_element_type=jnp.float32)
    h1 = jnp.maximum(acc1 + b1_ref[...], 0.0)

    # Keep only centres that land on real image rows (offset-in-image 2..H+1);
    # every other row becomes an exact zero, which is simultaneously conv2's
    # SAME padding and the barrier between stacked images.
    m = (jax.lax.broadcasted_iota(jnp.int32, (R - 2, 1), 0) + 1) % P
    h1 = jnp.where((m >= 2) & (m <= H + 1), h1, 0.0).astype(jnp.bfloat16)

    # conv2: 3 row-shifted banded GEMMs; acc2[j] is the conv2 output whose
    # centre sits on x row c2 = j + 2.
    acc2 = jnp.dot(h1[0:R - 4], wb2_ref[0], preferred_element_type=jnp.float32)
    acc2 = acc2 + jnp.dot(h1[1:R - 3], wb2_ref[1],
                          preferred_element_type=jnp.float32)
    acc2 = acc2 + jnp.dot(h1[2:R - 2], wb2_ref[2],
                          preferred_element_type=jnp.float32)
    y = jnp.maximum(acc2 + b2_ref[...], 0.0)

    # Image b's output rows are y[b*P : b*P + H] (static slices, bt is small).
    for b in range(bt):
        out_ref[pl.ds(b * H, H), :] = y[b * P:b * P + H].astype(out_ref.dtype)


def _build_banded_weight(w_hwio, W):
    """(3,3,Ci,Co) HWIO conv weight -> (3, W*Ci, W*Co) banded GEMM weight.

    out_rows[h] = sum_ky in_rows[h+ky-1] @ band[ky] implements the SAME-padded
    3x3 conv: x-direction padding is built into the band, y-direction padding
    is provided by the caller's zero halo rows.
    """
    kh, kw, Ci, Co = w_hwio.shape
    kx = jnp.arange(kw)[:, None, None]
    u = jnp.arange(W)[None, :, None]      # input column index
    w = jnp.arange(W)[None, None, :]      # output column index
    sel = (u == w + kx - 1).astype(w_hwio.dtype)           # (kw, W, W)
    band = jnp.einsum("xuw,yxio->yuiwo", sel, w_hwio)      # (kh, W, Ci, W, Co)
    return band.reshape(kh, W * Ci, W * Co)


def _pick_batch_tile(B, H, W, Cin, Cout):
    """Largest batch tile whose activation slabs comfortably fit in VMEM."""
    P = H + 4

    def footprint(bt):
        r = bt * P
        return r * W * Cin * 2 + r * W * Cout * 2 + 2 * r * W * Cout * 4

    budget = 8 * 1024 * 1024
    if footprint(B) <= budget:
        return B
    for cand in range(B - 1, 0, -1):
        if B % cand:
            continue
        if (cand * P) % 8 or (cand * H) % 8:   # keep block dims (8,128)-legal
            continue
        if footprint(cand) <= budget:
            return cand
    return B  # TODO(synk): raise vmem_limit_bytes / tile rows for huge H*B.


@jax.jit
def convblock_forward(x_nchw, params):
    """ConvBlock forward. Input/output are NCHW to match the PyTorch module."""
    w1, b1 = params["w1"], params["b1"]       # (Co, Ci, 3, 3), (Co,)
    w2, b2 = params["w2"], params["b2"]       # (Co, Co, 3, 3), (Co,)
    B, Cin, H, W = x_nchw.shape
    Cout = w1.shape[0]
    P = H + 4

    # PyTorch OIHW -> HWIO, then fold kx and W into banded GEMM weights.
    w1_hwio = jnp.transpose(w1, (2, 3, 1, 0)).astype(jnp.float32)
    w2_hwio = jnp.transpose(w2, (2, 3, 1, 0)).astype(jnp.float32)
    wb1 = _build_banded_weight(w1_hwio, W).astype(jnp.bfloat16)
    wb2 = _build_banded_weight(w2_hwio, W).astype(jnp.bfloat16)
    b1t = jnp.tile(b1.astype(jnp.float32).reshape(-1), W).reshape(1, W * Cout)
    b2t = jnp.tile(b2.astype(jnp.float32).reshape(-1), W).reshape(1, W * Cout)

    # NCHW -> lane-dense rows (W*Cin lanes) with a 2-row zero halo per image
    # side, images stacked along the sublane axis: (B*(H+4), W*Cin).
    # TODO(synk): if the surrounding model kept NHWC end-to-end, this repack
    # and the output transpose would disappear entirely.
    x_rows = jnp.transpose(x_nchw, (0, 2, 3, 1)).reshape(B, H, W * Cin)
    x_rows = jnp.pad(x_rows, ((0, 0), (2, 2), (0, 0)))
    x_rows = x_rows.reshape(B * P, W * Cin).astype(jnp.bfloat16)

    bt = _pick_batch_tile(B, H, W, Cin, Cout)
    steps = B // bt
    R = bt * P

    flops = 2 * steps * (3 * (R - 2) * (W * Cin) * (W * Cout)
                         + 3 * (R - 4) * (W * Cout) * (W * Cout))
    bytes_accessed = (B * P * W * Cin * 2            # x rows (bf16)
                      + 3 * W * Cin * W * Cout * 2   # wb1 (bf16)
                      + 3 * W * Cout * W * Cout * 2  # wb2 (bf16)
                      + 2 * W * Cout * 4             # biases (f32)
                      + B * H * W * Cout * 4)        # output (f32)

    out_rows = pl.pallas_call(
        functools.partial(convblock_kernel, bt=bt, H=H),
        out_shape=jax.ShapeDtypeStruct((B * H, W * Cout), jnp.float32),
        grid_spec=pltpu.PrefetchScalarGridSpec(
            num_scalar_prefetch=0,
            grid=(steps,),
            in_specs=[
                pl.BlockSpec((R, W * Cin), lambda i: (i, 0)),
                pl.BlockSpec((3, W * Cin, W * Cout), lambda i: (0, 0, 0)),
                pl.BlockSpec((1, W * Cout), lambda i: (0, 0)),
                pl.BlockSpec((3, W * Cout, W * Cout), lambda i: (0, 0, 0)),
                pl.BlockSpec((1, W * Cout), lambda i: (0, 0)),
            ],
            out_specs=pl.BlockSpec((bt * H, W * Cout), lambda i: (i, 0)),
        ),
        compiler_params=pltpu.CompilerParams(
            dimension_semantics=("parallel",),
            vmem_limit_bytes=32 * 1024 * 1024),
        cost_estimate=pl.CostEstimate(flops=flops, transcendentals=0,
                                      bytes_accessed=bytes_accessed),
    )(x_rows, wb1, b1t, wb2, b2t)

    out_nhwc = out_rows.reshape(B, H, W, Cout)
    return jnp.transpose(out_nhwc, (0, 3, 1, 2))      # back to NCHW


def _reference_forward(x_nchw, params):
    """Pure-JAX f32 reference (lax conv) for correctness checking."""
    w1_hwio = jnp.transpose(params["w1"], (2, 3, 1, 0)).astype(jnp.float32)
    w2_hwio = jnp.transpose(params["w2"], (2, 3, 1, 0)).astype(jnp.float32)
    x = jnp.transpose(x_nchw, (0, 2, 3, 1)).astype(jnp.float32)
    dn = ("NHWC", "HWIO", "NHWC")
    h = jax.lax.conv_general_dilated(x, w1_hwio, (1, 1), "SAME",
                                     dimension_numbers=dn)
    h = jnp.maximum(h + params["b1"].reshape(1, 1, 1, -1), 0.0)
    h = jax.lax.conv_general_dilated(h, w2_hwio, (1, 1), "SAME",
                                     dimension_numbers=dn)
    h = jnp.maximum(h + params["b2"].reshape(1, 1, 1, -1), 0.0)
    return jnp.transpose(h, (0, 3, 1, 2))


if __name__ == "__main__":
    B, Cin, Cout, H, W = 2, 4, 8, 16, 16

    key = jax.random.PRNGKey(0)
    kx, kw1, kb1, kw2, kb2 = jax.random.split(key, 5)

    x = jax.random.normal(kx, (B, Cin, H, W), jnp.float32)
    params = {
        "w1": jax.random.normal(kw1, (Cout, Cin, 3, 3), jnp.float32) * 0.1,
        "b1": jax.random.normal(kb1, (Cout,), jnp.float32) * 0.1,
        "w2": jax.random.normal(kw2, (Cout, Cout, 3, 3), jnp.float32) * 0.1,
        "b2": jax.random.normal(kb2, (Cout,), jnp.float32) * 0.1,
    }

    out = convblock_forward(x, params)
    jax.block_until_ready(out)

    ref = _reference_forward(x, params)
    assert out.shape == (B, Cout, H, W), out.shape
    err = float(jnp.max(jnp.abs(out - ref)))
    assert err < 5e-2, f"max abs error {err}"  # bf16 MXU operands, f32 accum

    print("KERNEL_OK")
</pallas_src>

<mosaic_0001>
module attributes {stable_mosaic.version = 11 : i64} {
  func.func @convblock_kernel(%arg0: i32, %arg1: memref<40x64xbf16, #tpu.memory_space<vmem>>, %arg2: memref<3x64x128xbf16, #tpu.memory_space<vmem>>, %arg3: memref<1x128xf32, #tpu.memory_space<vmem>>, %arg4: memref<3x128x128xbf16, #tpu.memory_space<vmem>>, %arg5: memref<1x128xf32, #tpu.memory_space<vmem>>, %arg6: memref<32x128xf32, #tpu.memory_space<vmem>>) attributes {dimension_semantics = [#tpu.dimension_semantics<parallel>], iteration_bounds = array<i64: 1>, scalar_prefetch = 0 : i64, scratch_operands = 0 : i64, tpu.core_type = #tpu.core_type<tc>, window_params = [{transform_indices = @transform_0, window_bounds = array<i64: 40, 64>}, {pipeline_mode = #tpu.pipeline_mode<synchronous>, transform_indices = @transform_1, window_bounds = array<i64: 3, 64, 128>}, {pipeline_mode = #tpu.pipeline_mode<synchronous>, transform_indices = @transform_2, window_bounds = array<i64: 1, 128>}, {pipeline_mode = #tpu.pipeline_mode<synchronous>, transform_indices = @transform_3, window_bounds = array<i64: 3, 128, 128>}, {pipeline_mode = #tpu.pipeline_mode<synchronous>, transform_indices = @transform_4, window_bounds = array<i64: 1, 128>}, {transform_indices = @transform_5, window_bounds = array<i64: 32, 128>}]} {
    %c0 = arith.constant 0 : index
    %c0_0 = arith.constant 0 : index
    %0 = vector.load %arg1[%c0, %c0_0] : memref<40x64xbf16, #tpu.memory_space<vmem>>, vector<40x64xbf16>
    %1 = vector.extract_strided_slice %0 {offsets = [0, 0], sizes = [38, 64], strides = [1, 1]} : vector<40x64xbf16> to vector<38x64xbf16>
    %c0_1 = arith.constant 0 : index
    %c0_2 = arith.constant 0 : index
    %c0_3 = arith.constant 0 : index
    %2 = vector.load %arg2[%c0_1, %c0_2, %c0_3] : memref<3x64x128xbf16, #tpu.memory_space<vmem>>, vector<1x64x128xbf16>
    %3 = vector.shape_cast %2 : vector<1x64x128xbf16> to vector<64x128xbf16>
    %cst = arith.constant dense<0.000000e+00> : vector<38x128xf32>
    %4 = tpu.matmul %1, %3, %cst {dimension_numbers = #tpu.dot_dimension_numbers<[1], [0], [0], [1], [0, 0, 1, 1], [], []>} : vector<38x64xbf16>, vector<64x128xbf16>, vector<38x128xf32> -> vector<38x128xf32>
    %5 = vector.extract_strided_slice %0 {offsets = [1, 0], sizes = [38, 64], strides = [1, 1]} : vector<40x64xbf16> to vector<38x64xbf16>
    %c1 = arith.constant 1 : index
    %c0_4 = arith.constant 0 : index
    %c0_5 = arith.constant 0 : index
    %6 = vector.load %arg2[%c1, %c0_4, %c0_5] : memref<3x64x128xbf16, #tpu.memory_space<vmem>>, vector<1x64x128xbf16>
    %7 = vector.shape_cast %6 : vector<1x64x128xbf16> to vector<64x128xbf16>
    %cst_6 = arith.constant dense<0.000000e+00> : vector<38x128xf32>
    %8 = tpu.matmul %5, %7, %cst_6 {dimension_numbers = #tpu.dot_dimension_numbers<[1], [0], [0], [1], [0, 0, 1, 1], [], []>} : vector<38x64xbf16>, vector<64x128xbf16>, vector<38x128xf32> -> vector<38x128xf32>
    %9 = arith.addf %4, %8 : vector<38x128xf32>
    %10 = vector.extract_strided_slice %0 {offsets = [2, 0], sizes = [38, 64], strides = [1, 1]} : vector<40x64xbf16> to vector<38x64xbf16>
    %c2 = arith.constant 2 : index
    %c0_7 = arith.constant 0 : index
    %c0_8 = arith.constant 0 : index
    %11 = vector.load %arg2[%c2, %c0_7, %c0_8] : memref<3x64x128xbf16, #tpu.memory_space<vmem>>, vector<1x64x128xbf16>
    %12 = vector.shape_cast %11 : vector<1x64x128xbf16> to vector<64x128xbf16>
    %cst_9 = arith.constant dense<0.000000e+00> : vector<38x128xf32>
    %13 = tpu.matmul %10, %12, %cst_9 {dimension_numbers = #tpu.dot_dimension_numbers<[1], [0], [0], [1], [0, 0, 1, 1], [], []>} : vector<38x64xbf16>, vector<64x128xbf16>, vector<38x128xf32> -> vector<38x128xf32>
    %14 = arith.addf %9, %13 : vector<38x128xf32>
    %c0_10 = arith.constant 0 : index
    %c0_11 = arith.constant 0 : index
    %15 = vector.load %arg3[%c0_10, %c0_11] : memref<1x128xf32, #tpu.memory_space<vmem>>, vector<1x128xf32>
    %16 = vector.broadcast %15 : vector<1x128xf32> to vector<38x128xf32>
    %17 = arith.addf %14, %16 : vector<38x128xf32>
    %cst_12 = arith.constant 0.000000e+00 : f32
    %18 = vector.broadcast %cst_12 : f32 to vector<38x128xf32>
    %19 = arith.maximumf %17, %18 : vector<38x128xf32>
    %20 = tpu.iota {dimensions = array<i32: 0>} : vector<38x1xi32>
    %c1_i32 = arith.constant 1 : i32
    %21 = vector.broadcast %c1_i32 : i32 to vector<38x1xi32>
    %22 = arith.addi %20, %21 : vector<38x1xi32>
    %c20_i32 = arith.constant 20 : i32
    %c0_i32 = arith.constant 0 : i32
    %23 = arith.cmpi eq, %c20_i32, %c0_i32 : i32
    %c1_i32_13 = arith.constant 1 : i32
    %24 = arith.select %23, %c1_i32_13, %c20_i32 : i32
    %25 = vector.broadcast %24 : i32 to vector<38x1xi32>
    %26 = arith.remsi %22, %25 : vector<38x1xi32>
    %c0_i32_14 = arith.constant 0 : i32
    %27 = vector.broadcast %c0_i32_14 : i32 to vector<38x1xi32>
    %28 = arith.cmpi ne, %26, %27 : vector<38x1xi32>
    %c0_i32_15 = arith.constant 0 : i32
    %29 = vector.broadcast %c0_i32_15 : i32 to vector<38x1xi32>
    %30 = arith.cmpi slt, %26, %29 : vector<38x1xi32>
    %c0_i32_16 = arith.constant 0 : i32
    %31 = arith.cmpi slt, %24, %c0_i32_16 : i32
    %32 = vector.broadcast %31 : i1 to vector<38x1xi1>
    %33 = vector.broadcast %32 : vector<38x1xi1> to vector<38x1xi1>
    %34 = arith.xori %30, %33 : vector<38x1xi1>
    %35 = arith.andi %34, %28 : vector<38x1xi1>
    %36 = vector.broadcast %24 : i32 to vector<38x1xi32>
    %37 = arith.addi %26, %36 : vector<38x1xi32>
    %38 = arith.select %35, %37, %26 : vector<38x1xi1>, vector<38x1xi32>
    %c2_i32 = arith.constant 2 : i32
    %39 = vector.broadcast %c2_i32 : i32 to vector<38x1xi32>
    %40 = arith.cmpi sge, %38, %39 : vector<38x1xi32>
    %c17_i32 = arith.constant 17 : i32
    %41 = vector.broadcast %c17_i32 : i32 to vector<38x1xi32>
    %42 = arith.cmpi sle, %38, %41 : vector<38x1xi32>
    %43 = arith.andi %40, %42 : vector<38x1xi1>
    %cst_17 = arith.constant 0.000000e+00 : f32
    %44 = vector.shape_cast %43 : vector<38x1xi1> to vector<38x1xi1>
    %45 = vector.broadcast %44 : vector<38x1xi1> to vector<38x128xi1>
    %46 = vector.broadcast %cst_17 : f32 to vector<38x128xf32>
    %47 = arith.select %45, %19, %46 : vector<38x128xi1>, vector<38x128xf32>
    %48 = arith.truncf %47 : vector<38x128xf32> to vector<38x128xbf16>
    %49 = vector.extract_strided_slice %48 {offsets = [0, 0], sizes = [36, 128], strides = [1, 1]} : vector<38x128xbf16> to vector<36x128xbf16>
    %c0_18 = arith.constant 0 : index
    %c0_19 = arith.constant 0 : index
    %c0_20 = arith.constant 0 : index
    %50 = vector.load %arg4[%c0_18, %c0_19, %c0_20] : memref<3x128x128xbf16, #tpu.memory_space<vmem>>, vector<1x128x128xbf16>
    %51 = vector.shape_cast %50 : vector<1x128x128xbf16> to vector<128x128xbf16>
    %cst_21 = arith.constant dense<0.000000e+00> : vector<36x128xf32>
    %52 = tpu.matmul %49, %51, %cst_21 {dimension_numbers = #tpu.dot_dimension_numbers<[1], [0], [0], [1], [0, 0, 1, 1], [], []>} : vector<36x128xbf16>, vector<128x128xbf16>, vector<36x128xf32> -> vector<36x128xf32>
    %53 = vector.extract_strided_slice %48 {offsets = [1, 0], sizes = [36, 128], strides = [1, 1]} : vector<38x128xbf16> to vector<36x128xbf16>
    %c1_22 = arith.constant 1 : index
    %c0_23 = arith.constant 0 : index
    %c0_24 = arith.constant 0 : index
    %54 = vector.load %arg4[%c1_22, %c0_23, %c0_24] : memref<3x128x128xbf16, #tpu.memory_space<vmem>>, vector<1x128x128xbf16>
    %55 = vector.shape_cast %54 : vector<1x128x128xbf16> to vector<128x128xbf16>
    %cst_25 = arith.constant dense<0.000000e+00> : vector<36x128xf32>
    %56 = tpu.matmul %53, %55, %cst_25 {dimension_numbers = #tpu.dot_dimension_numbers<[1], [0], [0], [1], [0, 0, 1, 1], [], []>} : vector<36x128xbf16>, vector<128x128xbf16>, vector<36x128xf32> -> vector<36x128xf32>
    %57 = arith.addf %52, %56 : vector<36x128xf32>
    %58 = vector.extract_strided_slice %48 {offsets = [2, 0], sizes = [36, 128], strides = [1, 1]} : vector<38x128xbf16> to vector<36x128xbf16>
    %c2_26 = arith.constant 2 : index
    %c0_27 = arith.constant 0 : index
    %c0_28 = arith.constant 0 : index
    %59 = vector.load %arg4[%c2_26, %c0_27, %c0_28] : memref<3x128x128xbf16, #tpu.memory_space<vmem>>, vector<1x128x128xbf16>
    %60 = vector.shape_cast %59 : vector<1x128x128xbf16> to vector<128x128xbf16>
    %cst_29 = arith.constant dense<0.000000e+00> : vector<36x128xf32>
    %61 = tpu.matmul %58, %60, %cst_29 {dimension_numbers = #tpu.dot_dimension_numbers<[1], [0], [0], [1], [0, 0, 1, 1], [], []>} : vector<36x128xbf16>, vector<128x128xbf16>, vector<36x128xf32> -> vector<36x128xf32>
    %62 = arith.addf %57, %61 : vector<36x128xf32>
    %c0_30 = arith.constant 0 : index
    %c0_31 = arith.constant 0 : index
    %63 = vector.load %arg5[%c0_30, %c0_31] : memref<1x128xf32, #tpu.memory_space<vmem>>, vector<1x128xf32>
    %64 = vector.broadcast %63 : vector<1x128xf32> to vector<36x128xf32>
    %65 = arith.addf %62, %64 : vector<36x128xf32>
    %cst_32 = arith.constant 0.000000e+00 : f32
    %66 = vector.broadcast %cst_32 : f32 to vector<36x128xf32>
    %67 = arith.maximumf %65, %66 : vector<36x128xf32>
    %68 = vector.extract_strided_slice %67 {offsets = [0, 0], sizes = [16, 128], strides = [1, 1]} : vector<36x128xf32> to vector<16x128xf32>
    %c0_33 = arith.constant 0 : index
    %c0_34 = arith.constant 0 : index
    %69 = vector.load %arg6[%c0_33, %c0_34] : memref<32x128xf32, #tpu.memory_space<vmem>>, vector<16x128xf32>
    tpu.vector_store %arg6[%c0_33, %c0_34], %68 {strides = array<i32>} : memref<32x128xf32, #tpu.memory_space<vmem>>, vector<16x128xf32>,
    %70 = vector.extract_strided_slice %67 {offsets = [20, 0], sizes = [16, 128], strides = [1, 1]} : vector<36x128xf32> to vector<16x128xf32>
    %c16 = arith.constant 16 : index
    %c0_35 = arith.constant 0 : index
    %71 = vector.load %arg6[%c16, %c0_35] : memref<32x128xf32, #tpu.memory_space<vmem>>, vector<16x128xf32>
    tpu.vector_store %arg6[%c16, %c0_35], %70 {strides = array<i32>} : memref<32x128xf32, #tpu.memory_space<vmem>>, vector<16x128xf32>,
    return
  }
  func.func @transform_0(%arg0: i32) -> (i32, i32) {
    %c0_i32 = arith.constant 0 : i32
    %c0_i32_0 = arith.constant 0 : i32
    return %arg0, %c0_i32 : i32, i32
  }
  func.func @transform_1(%arg0: i32) -> (i32, i32, i32) {
    %c0_i32 = arith.constant 0 : i32
    %c0_i32_0 = arith.constant 0 : i32
    %c0_i32_1 = arith.constant 0 : i32
    %c0_i32_2 = arith.constant 0 : i32
    return %c0_i32, %c0_i32_0, %c0_i32_1 : i32, i32, i32
  }
  func.func @transform_2(%arg0: i32) -> (i32, i32) {
    %c0_i32 = arith.constant 0 : i32
    %c0_i32_0 = arith.constant 0 : i32
    %c0_i32_1 = arith.constant 0 : i32
    return %c0_i32, %c0_i32_0 : i32, i32
  }
  func.func @transform_3(%arg0: i32) -> (i32, i32, i32) {
    %c0_i32 = arith.constant 0 : i32
    %c0_i32_0 = arith.constant 0 : i32
    %c0_i32_1 = arith.constant 0 : i32
    %c0_i32_2 = arith.constant 0 : i32
    return %c0_i32, %c0_i32_0, %c0_i32_1 : i32, i32, i32
  }
  func.func @transform_4(%arg0: i32) -> (i32, i32) {
    %c0_i32 = arith.constant 0 : i32
    %c0_i32_0 = arith.constant 0 : i32
    %c0_i32_1 = arith.constant 0 : i32
    return %c0_i32, %c0_i32_0 : i32, i32
  }
  func.func @transform_5(%arg0: i32) -> (i32, i32) {
    %c0_i32 = arith.constant 0 : i32
    %c0_i32_0 = arith.constant 0 : i32
    return %arg0, %c0_i32 : i32, i32
  }
}

</mosaic_0001>

<bundles_post_ra>
// kernel: tile.13
= control target key start
LH: loop header
LB: loop body
LE: loop exit
PB: predicated region body
PF: predicated region fallthrough
CT: control target
= control target key end

     0   :  { %s28_s0 = inlined_call_operand.vmem [shape: f32[8], index: 0, kind: input, shape index: {}]   ;;  %s29_s1 = inlined_call_operand.vmem [shape: f32[16,8], index: 1, kind: output, shape index: {}]  }
   0x1   :  { %v4_v0 = vld [vmem:[%s28_s0] ss:$0 sm:$0xff] }
   0x2   :  { %5 = vst [vmem:[%s29_s1] sm:$0xff] %v4_v0 }
   0x3   :  { %8 = vst [vmem:[%s29_s1 + $0x8] sm:$0xff] %v4_v0 }

// kernel: tile.14
= control target key start
LH: loop header
LB: loop body
LE: loop exit
PB: predicated region body
PF: predicated region fallthrough
CT: control target
= control target key end

     0   :  { %s131_s10 = smov 120   ;;  %s132_s11 = smov 104   ;;  %vm3_vm0 = vcmask 64512   ;;  %vm9_vm1 = vcmask 1048512   ;;  %vm15_vm2 = vcmask 982912   ;;  %vm21_vm3 = vcmask 917312   ;;  %s207_s0 = inlined_call_operand.vmem [shape: f32[16,8], index: 0, kind: input, shape index: {}]   ;;  %s208_s1 = inlined_call_operand.vmem [shape: f32[1,128], index: 1, kind: output, shape index: {}]  }
   0x1   :  { %v101_v0 = vld [vmem:[%s207_s0 + $0xf] sm:$0x1]   ;;  %v103_v1 = vld [vmem:[%s207_s0 + $0xd] sm:$0x1]   ;;  %v105_v2 = vld [vmem:[%s207_s0 + $0xb] sm:$0x1]  }
   0x2   :  { %7 = vrot.lane.b32.xlu0 %v101_v0, %s131_s10  ;;  %19 = vrot.lane.b32.xlu1 %v103_v1, %s132_s11  ;;  %s133_s14 = smov 88   ;;  %v102_v3 = vld [vmem:[%s207_s0 + $0xe] sm:$0x1]   ;;  %v104_v4 = vld [vmem:[%s207_s0 + $0xc] sm:$0x1]   ;;  %s134_s19 = smov 112  }
   0x3   :  { %31 = vrot.lane.b32.xlu2 %v105_v2, %s133_s14  ;;  %s135_s20 = smov 96   ;;  %v106_v5 = vld [vmem:[%s207_s0 + $0xa] sm:$0x1]   ;;  %s136_s23 = smov 80   ;;  %v107_v6 = vld [vmem:[%s207_s0 + $0x9] sm:$0x1]  }
   0x4   :  { %v108_v7 = vld [vmem:[%s207_s0 + $0x8] sm:$0x1]   ;;  %s137_s28 = smov 72   ;;  %s138_s29 = smov 64   ;;  %v109_v8 = vld [vmem:[%s207_s0 + $0x7] sm:$0x1]  }
   0x5   :  { %s139_s3 = smov 56   ;;  %v110_v9 = vld [vmem:[%s207_s0 + $0x6] sm:$0x1]   ;;  %v111_v10 = vld [vmem:[%s207_s0 + $0x5] sm:$0x1]   ;;  %s140_s8 = smov 48  }
   0x6   :  { %s141_s9 = smov 40   ;;  %v112_v11 = vld [vmem:[%s207_s0 + $0x4] sm:$0x1]   ;;  %s142_s12 = smov 32   ;;  %v113_v12 = vld [vmem:[%s207_s0 + $0x3] sm:$0x1]  }
   0x7   :  { %v114_v13 = vld [vmem:[%s207_s0 + $0x2] sm:$0x1]   ;;  %s143_s17 = smov 24   ;;  %s144_s18 = smov 16   ;;  %v115_v14 = vld [vmem:[%s207_s0 + $0x1] sm:$0x1]  }
   0x8   :  { %s145_s21 = smov 8   ;;  %v2_v15 = vld [vmem:[%s207_s0] sm:$0x1]   ;;  %vm27_vm4 = vcmask 851712   ;;  %vm33_vm5 = vcmask 786112   ;;  %vm39_vm6 = vcmask 720512  }
   0x9   :  { %4 = vst.msk [vmem:[#allocation0] sm:$0x1] %vm3_vm0, %v2_v15   ;;  %vm45_vm7 = vcmask 654912   ;;  %vm51_vm8 = vcmask 589312   ;;  %vm57_vm9 = vcmask 523712   ;;  %vm63_vm10 = vcmask 458112  }
   0xa   :  { %13 = vrot.lane.b32.xlu0 %v102_v3, %s134_s19  ;;  %25 = vrot.lane.b32.xlu1 %v104_v4, %s135_s20  ;;  %vm69_vm11 = vcmask 392512   ;;  %vm75_vm12 = vcmask 326912   ;;  %vm81_vm13 = vcmask 261312   ;;  %vm87_vm14 = vcmask 195712  }
   0xb   :  { %37 = vrot.lane.b32.xlu2 %v106_v5, %s136_s23  ;;  %vm93_vm15 = vcmask 130112  }
  0x12   :  { %43 = vrot.lane.b32.xlu0 %v107_v6, %s137_s28  ;;  %49 = vrot.lane.b32.xlu1 %v108_v7, %s138_s29 }
  0x13   :  { %55 = vrot.lane.b32.xlu2 %v109_v8, %s139_s3 }
  0x1a   :  { %61 = vrot.lane.b32.xlu0 %v110_v9, %s140_s8  ;;  %67 = vrot.lane.b32.xlu1 %v111_v10, %s141_s9 }
  0x1b   :  { %73 = vrot.lane.b32.xlu2 %v112_v11, %s142_s12 }
  0x22   :  { %79 = vrot.lane.b32.xlu0 %v113_v12, %s143_s17  ;;  %85 = vrot.lane.b32.xlu1 %v114_v13, %s144_s18 }
  0x23   :  { %91 = vrot.lane.b32.xlu2 %v115_v14, %s145_s21 }
  0x5d   :  { %v32_v16 = vpop.permute.xlu2 %31  }
  0x65   :  { %v38_v17 = vpop.permute.xlu2 %37  }
  0x6d   :  { %v56_v18 = vpop.permute.xlu2 %55  }
  0x74   :  { %v8_v19 = vpop.permute.xlu0 %7   ;;  %v20_v20 = vpop.permute.xlu1 %19  }
  0x75   :  { %10 = vst.msk [vmem:[#allocation0] sm:$0x1] %vm9_vm1, %v8_v19   ;;  %v74_v21 = vpop.permute.xlu2 %73  }
  0x7c   :  { %v14_v22 = vpop.permute.xlu0 %13   ;;  %v26_v23 = vpop.permute.xlu1 %25  }
  0x7d   :  { %16 = vst.msk [vmem:[#allocation0] sm:$0x1] %vm15_vm2, %v14_v22   ;;  %v92_v24 = vpop.permute.xlu2 %91  }
  0x7e   :  { %22 = vst.msk [vmem:[#allocation0] sm:$0x1] %vm21_vm3, %v20_v20  }
  0x7f   :  { %28 = vst.msk [vmem:[#allocation0] sm:$0x1] %vm27_vm4, %v26_v23  }
  0x80   :  { %34 = vst.msk [vmem:[#allocation0] sm:$0x1] %vm33_vm5, %v32_v16  }
  0x81   :  { %40 = vst.msk [vmem:[#allocation0] sm:$0x1] %vm39_vm6, %v38_v17  }
  0x84   :  { %v44_v25 = vpop.permute.xlu0 %43   ;;  %v50_v26 = vpop.permute.xlu1 %49  }
  0x85   :  { %46 = vst.msk [vmem:[#allocation0] sm:$0x1] %vm45_vm7, %v44_v25  }
  0x86   :  { %52 = vst.msk [vmem:[#allocation0] sm:$0x1] %vm51_vm8, %v50_v26  }
  0x87   :  { %58 = vst.msk [vmem:[#allocation0] sm:$0x1] %vm57_vm9, %v56_v18  }
  0x8c   :  { %v62_v27 = vpop.permute.xlu0 %61   ;;  %v68_v28 = vpop.permute.xlu1 %67  }
  0x8d   :  { %64 = vst.msk [vmem:[#allocation0] sm:$0x1] %vm63_vm10, %v62_v27  }
  0x8e   :  { %70 = vst.msk [vmem:[#allocation0] sm:$0x1] %vm69_vm11, %v68_v28  }
  0x8f   :  { %76 = vst.msk [vmem:[#allocation0] sm:$0x1] %vm75_vm12, %v74_v21  }
  0x94   :  { %v80_v29 = vpop.permute.xlu0 %79   ;;  %v86_v30 = vpop.permute.xlu1 %85  }
  0x95   :  { %82 = vst.msk [vmem:[#allocation0] sm:$0x1] %vm81_vm13, %v80_v29  }
  0x96   :  { %88 = vst.msk [vmem:[#allocation0] sm:$0x1] %vm87_vm14, %v86_v30  }
  0x97   :  { %94 = vst.msk [vmem:[#allocation0] sm:$0x1] %vm93_vm15, %v92_v24  }
  0x9e   :  { %v97_v31 = vld [vmem:[#allocation0] sm:$0x1] }
  0x9f   :  { %100 = vst [vmem:[%s208_s1] sm:$0x1] %v97_v31 }

// kernel: convblock_forward.1
= control target key start
LH: loop header
LB: loop body
LE: loop exit
PB: predicated region body
PF: predicated region fallthrough
CT: control target
= control target key end

     0   :  { %vm56_vm0 = vsmask.f32 7424  ;;  %vm104_vm1 = vcmask 523264   ;;  %vm199_vm2 = vcmask 1046528   ;;  %v280_v36 = vlaneseq  ;;  %s1382_s1 = inlined_call_operand.vmem [shape: bf16[3,64,128], index: 1, kind: input, shape index: {}]   ;;  %s1383_s0 = inlined_call_operand.vmem [shape: bf16[40,64], index: 0, kind: input, shape index: {}]   ;;  %s1384_s2 = inlined_call_operand.vmem [shape: f32[1,128], index: 2, kind: input, shape index: {}]   ;;  %s1385_s3 = inlined_call_operand.vmem [shape: bf16[3,128,128], index: 3, kind: input, shape index: {}]   ;;  %s1386_s4 = inlined_call_operand.vmem [shape: f32[1,128], index: 4, kind: input, shape index: {}]   ;;  %s1387_s5 = inlined_call_operand.vmem [shape: f32[32,128], index: 5, kind: output, shape index: {}]  }
   0x1   :  { %v1055_v0 = vld [vmem:[%s1382_s1 + $0x38] sm:$0xff]  ;;  %v25_v1 = vld [vmem:[%s1383_s0 + $0x10] sm:$0xf]  ;;  %v1046_v6 = vld [vmem:[%s1383_s0] sm:$0xff]  ;;  %v1095_v61 = vmov 0  }
   0x2   :  { %v1051_v2 = vld [vmem:[%s1382_s1 + $0x18] sm:$0xff]  ;;  %1084 = vmatpush.bf16.msra.mxu2 %v1055_v0  ;;  %v1054_v3 = vld [vmem:[%s1382_s1 + $0x30] sm:$0xff]  ;;  %v52_v4 = vunpack.c.l.b16 %v25_v1  ;;  %118 = vmatpush.bf16.msra.mxu0 %v1055_v0  ;;  %v1047_v7 = vld [vmem:[%s1383_s0 + $0x8] sm:$0xff]  ;;  %v58_v11 = vshrl.u32 %v1046_v6, 16  ;;  %v60_v12 = vshll.u32 %v1046_v6, 16  ;;  %v200_v31 = vrot.slane %v1046_v6, 1 }
   0x3   :  { %171 = vmatpush.bf16.msra.mxu1 %v1051_v2  ;;  %v1050_v8 = vld [vmem:[%s1382_s1 + $0x10] sm:$0xff]  ;;  %v1053_v9 = vld [vmem:[%s1382_s1 + $0x28] sm:$0xff]  ;;  %v65_v13 = vshll.u32 %v1047_v7, 16  ;;  %v1052_v18 = vld [vmem:[%s1382_s1 + $0x20] sm:$0xff]  ;;  %v69_v24 = vshrl.u32 %v1047_v7, 16  ;;  %v201_v32 = vrot.slane %v1047_v7, 1 }
   0x4   :  { %v55_v5 = vpack.c.b16 %v52_v4, %v52_v4  ;;  %v62_v14 = vrot.slane %v60_v12, 1  ;;  %v1049_v17 = vld [vmem:[%s1382_s1 + $0x8] sm:$0xff]  ;;  %v1048_v22 = vld [vmem:[%s1382_s1] sm:$0xff]  ;;  %v1059_v25 = vld [vmem:[%s1382_s1 + $0x58] sm:$0xff]  ;;  %v1184_v37 = vshrl.u32 %v280_v36, 7 }
   0x5   :  { %v67_v20 = vrot.slane %v65_v13, 1  ;;  %v1058_v27 = vld [vmem:[%s1382_s1 + $0x50] sm:$0xff]  ;;  %v1057_v29 = vld [vmem:[%s1382_s1 + $0x48] sm:$0xff]  ;;  %v1056_v30 = vld [vmem:[%s1382_s1 + $0x40] sm:$0xff]  ;;  %v202_v33 = vsel %vm199_vm2, %v200_v31, %v201_v32 }
   0x6   :  { %1085 = vmatpush.bf16.msra.mxu2 %v1054_v3  ;;  %v73_v10 = vshll.u32 %v55_v5, 16  ;;  %119 = vmatpush.bf16.msra.mxu0 %v1054_v3  ;;  %v77_v16 = vshrl.u32 %v55_v5, 16  ;;  %v63_v19 = vor.u32 %v62_v14, %v58_v11  ;;  %v203_v34 = vrot.slane %v55_v5, 1  ;;  %v1067_v43 = vld [vmem:[%s1385_s3 + $0x38] sm:$0xff]  ;;  %v1066_v51 = vld [vmem:[%s1385_s3 + $0x30] sm:$0xff]  ;;  %v1065_v58 = vld [vmem:[%s1385_s3 + $0x28] sm:$0xff] }
   0x7   :  { %172 = vmatpush.bf16.msra.mxu1 %v1050_v8  ;;  %v71_v26 = vor.u32 %v69_v24, %v67_v20  ;;  %v1187_v38 = vadd.s32 1, %v1184_v37  ;;  %v282_v42 = vadd.s32 8, %v1184_v37  ;;  %v283_v54 = vadd.s32 16, %v1184_v37 }
   0x8   :  { %v75_v15 = vrot.slane %v73_v10, 1  ;;  %v68_v23 = vsel %vm56_vm0, %v63_v19, %v67_v20  ;;  %v204_v35 = vsel %vm199_vm2, %v201_v32, %v203_v34  ;;  %v284_v10 = vadd.s32 24, %v1184_v37 }
   0x9   :  { %v294_v39 = vand.u32 65535, %v1187_v38  ;;  %v295_v40 = vshrl.u32 %v1187_v38, 16  ;;  %v1195_v44 = vadd.s32 1, %v282_v42  ;;  %v1214_v59 = vadd.s32 1, %v283_v54 }
   0xa   :  { %1086 = vmatpush.bf16.msra.mxu2 %v1053_v9  ;;  %120 = vmatpush.bf16.msra.mxu0 %v1053_v9  ;;  %v79_v21 = vor.u32 %v77_v16, %v75_v15  ;;  %v76_v28 = vsel %vm56_vm0, %v71_v26, %v75_v15  ;;  %v1231_v15 = vadd.s32 1, %v284_v10  ;;  %v1063_v16 = vld [vmem:[%s1385_s3 + $0x18] sm:$0xff] }
   0xb   :  { %173 = vmatpush.bf16.msra.mxu1 %v1049_v17  ;;  %v298_v41 = vmul.u32 52428, %v294_v39  ;;  %v297_v45 = vmul.u32 52429, %v294_v39  ;;  %v1197_v46 = vmul.u32 52429, %v295_v40  ;;  %v323_v48 = vand.u32 65535, %v1195_v44 }
   0xc   :  { %v324_v49 = vshrl.u32 %v1195_v44, 16  ;;  %v300_v60 = vmul.u32 52428, %v295_v40  ;;  %v352_v1 = vand.u32 65535, %v1214_v59 }
   0xd   :  { %v301_v47 = vshll.u32 %v298_v41, 16  ;;  %v1201_v50 = vmul.u32 52428, %v323_v48  ;;  %v303_v52 = vshll.u32 %v1197_v46, 16  ;;  %v326_v55 = vmul.u32 52429, %v323_v48 }
   0xe   :  { %1087 = vmatpush.bf16.msra.mxu2 %v1052_v18  ;;  %121 = vmatpush.bf16.msra.mxu0 %v1052_v18  ;;  %v1208_v56 = vmul.u32 52429, %v324_v49  ;;  %v329_v3 = vmul.u32 52428, %v324_v49  ;;  %v1227_v9 = vmul.u32 52428, %v352_v1  ;;  %v302_v11 = vshrl.u32 %v298_v41, 16  ;;  %v1074_v49 = vld [vmem:[%s1385_s3 + $0x70] sm:$0xff] }
   0xf   :  { %174 = vmatpush.bf16.msra.mxu1 %v1048_v22  ;;  %vm305_vm3 = vc.u32 %v297_v45, %v301_v47  ;;  %v307_v53 = vadd.s32 %v301_v47, %v297_v45  ;;  %v330_v57 = vshll.u32 %v1201_v50, 16  ;;  %v304_v20 = vshrl.u32 %v1197_v46, 16  ;;  %v1061_v46 = vld [vmem:[%s1385_s3 + $0x8] sm:$0xff] }
  0x10   :  { %v306_v62 = vsel %vm305_vm3, 1, %v1095_v61  ;;  %v332_v63 = vshll.u32 %v1208_v56, 16  ;;  %v359_v19 = vshll.u32 %v1227_v9, 16  ;;  %v333_v41 = vshrl.u32 %v1208_v56, 16 }
  0x11   :  { %871 = vmatmul.msk.bf16.vlgmr.msra.gmra.mxu2 %vm104_vm1, %v79_v21  ;;  %869 = vmatmul.msk.bf16.vlgmr.msra.gmra.mxu0 %vm104_vm1, %v68_v23  ;;  %vm309_vm4 = vc.u32 %v307_v53, %v303_v52  ;;  %vm334_vm5 = vc.u32 %v326_v55, %v330_v57  ;;  %v336_v0 = vadd.s32 %v330_v57, %v326_v55  ;;  %v381_v21 = vand.u32 65535, %v1231_v15 }
  0x12   :  { %1088 = vmatpush.bf16.msrb.mxu2 %v1051_v2  ;;  %888 = vmatmul.msk.bf16.vlgmr.msra.gmra.mxu1 %vm104_vm1, %v1046_v6  ;;  %v308_v2 = vadd.s32 %v306_v62, %v300_v60  ;;  %v335_v6 = vsel %vm334_vm5, 1, %v1095_v61  ;;  %v331_v23 = vshrl.u32 %v1201_v50, 16 }
  0x13   :  { %690 = vmatpush.bf16.msrb.mxu0 %v1067_v43  ;;  %vm338_vm6 = vc.u32 %v336_v0, %v332_v63  ;;  %v337_v13 = vadd.s32 %v335_v6, %v329_v3  ;;  %v1082_v43 = vld [vmem:[%s1385_s3 + $0xb0] sm:$0xff]  ;;  %v1060_v63 = vld [vmem:[%s1385_s3] sm:$0xff] }
  0x14   :  { %v339_v14 = vsel %vm338_vm6, 1, %v1095_v61 }
  0x15   :  { %v341_v24 = vadd.s32 %v339_v14, %v337_v13 }
  0x16   :  { %1089 = vmatpush.bf16.msrb.mxu2 %v1050_v8  ;;  %v353_v8 = vshrl.u32 %v1214_v59, 16 }
  0x17   :  { %691 = vmatpush.bf16.msrb.mxu0 %v1066_v51  ;;  %v342_v42 = vadd.s32 %v341_v24, %v331_v23 }
  0x18   :  { %v1236_v18 = vmul.u32 52429, %v353_v8  ;;  %v358_v45 = vmul.u32 52428, %v353_v8  ;;  %v360_v8 = vshrl.u32 %v1227_v9, 16 }
  0x19   :  { %v343_v53 = vadd.s32 %v342_v42, %v333_v41  ;;  %v1070_v41 = vld [vmem:[%s1385_s3 + $0x50] sm:$0xff] }
  0x1a   :  { %1090 = vmatpush.bf16.msrb.mxu2 %v1049_v17  ;;  %v355_v17 = vmul.u32 52429, %v352_v1  ;;  %v361_v31 = vshll.u32 %v1236_v18, 16  ;;  %v1073_v1 = vld [vmem:[%s1385_s3 + $0x68] sm:$0xff] }
  0x1b   :  { %692 = vmatpush.bf16.msrb.mxu0 %v1065_v58  ;;  %v1081_v58 = vld [vmem:[%s1385_s3 + $0xa8] sm:$0xff] }
  0x1c   :  { %vm1253_vm7 = vc.u32 %v355_v17, %v359_v19 }
  0x1d   :  { %v364_v47 = vsel %vm1253_vm7, 1, %v1095_v61 }
  0x1e   :  { %1091 = vmatpush.bf16.msrb.mxu2 %v1048_v22  ;;  %v366_v57 = vadd.s32 %v364_v47, %v358_v45 }
  0x21   :  { %890 = vmatmul.msk.bf16.vlgmr.msrb.gmra.mxu2 %vm104_vm1, %v55_v5  ;;  %870 = vmatmul.msk.bf16.gmra.mxu0 %vm104_vm1, %v76_v28  ;;  %v310_v5 = vsel %vm309_vm4, 1, %v1095_v61  ;;  %v1246_v28 = vmul.u32 52428, %v381_v21 }
  0x22   :  { %242 = vmatpush.bf16.msra.mxu2 %v1059_v25  ;;  %889 = vmatmul.msk.bf16.gmra.mxu1 %vm104_vm1, %v1047_v7  ;;  %v1064_v7 = vld [vmem:[%s1385_s3 + $0x20] sm:$0xff]  ;;  %v312_v12 = vadd.s32 %v310_v5, %v308_v2  ;;  %v382_v25 = vshrl.u32 %v1231_v15, 16 }
  0x23   :  { %693 = vmatpush.bf16.msrb.mxu0 %v1064_v7  ;;  %v344_v7 = vshrl.u32 %v343_v53, 4 }
  0x24   :  { %v313_v22 = vadd.s32 %v312_v12, %v302_v11  ;;  %v1260_v36 = vmul.u32 52429, %v382_v25  ;;  %v387_v60 = vmul.u32 52428, %v382_v25  ;;  %v1080_v11 = vld [vmem:[%s1385_s3 + $0xa0] sm:$0xff]  ;;  %v389_v25 = vshrl.u32 %v1246_v28, 16 }
  0x26   :  { %243 = vmatpush.bf16.msra.mxu2 %v1058_v27  ;;  %v1083_v27 = vld [vmem:[%s1385_s3 + $0xb8] sm:$0xff]  ;;  %v314_v40 = vadd.s32 %v313_v22, %v304_v20  ;;  %v390_v50 = vshll.u32 %v1260_v36, 16  ;;  %v362_v22 = vshrl.u32 %v1236_v18, 16 }
  0x27   :  { %694 = vmatpush.bf16.msrb.mxu0 %v1063_v16  ;;  %786 = vmatpush.bf16.msrb.mxu1 %v1083_v27  ;;  %v1079_v27 = vld [vmem:[%s1385_s3 + $0x98] sm:$0xff] }
  0x28   :  { %v315_v52 = vshrl.u32 %v314_v40, 4 }
  0x2a   :  { %244 = vmatpush.bf16.msra.mxu2 %v1057_v29  ;;  %v285_v29 = vadd.s32 32, %v1184_v37  ;;  %v388_v37 = vshll.u32 %v1246_v28, 16  ;;  %v316_v6 = vmul.u32 20, %v315_v52  ;;  %v1069_v52 = vld [vmem:[%s1385_s3 + $0x48] sm:$0xff] }
  0x2b   :  { %787 = vmatpush.bf16.msrb.mxu1 %v1082_v43 }
  0x2c   :  { %v1263_v39 = vadd.s32 1, %v285_v29  ;;  %v317_v20 = vsub.s32 %v1187_v38, %v316_v6  ;;  %v1071_v38 = vld [vmem:[%s1385_s3 + $0x58] sm:$0xff] }
  0x2e   :  { %245 = vmatpush.bf16.msra.mxu2 %v1056_v30  ;;  %v1062_v30 = vld [vmem:[%s1385_s3 + $0x10] sm:$0xff]  ;;  %v410_v48 = vand.u32 65535, %v1263_v39  ;;  %v411_v54 = vshrl.u32 %v1263_v39, 16  ;;  %vm436_vm13 = vcmp.ne.s32.totalorder %v317_v20, 0  ;;  %vm441_vm14 = vcmp.lt.s32.totalorder %v317_v20, 0 }
  0x2f   :  { %695 = vmatpush.bf16.msrb.mxu0 %v1062_v30  ;;  %788 = vmatpush.bf16.msrb.mxu1 %v1081_v58  ;;  %v451_v40 = vadd.s32 20, %v317_v20  ;;  %vm446_vm15 = vmand %vm441_vm14, %vm436_vm13 }
  0x30   :  { %v1281_v55 = vmul.u32 52428, %v410_v48  ;;  %v413_v2 = vmul.u32 52429, %v410_v48  ;;  %v1296_v3 = vmul.u32 52429, %v411_v54  ;;  %v416_v29 = vmul.u32 52428, %v411_v54  ;;  %v1077_v48 = vld [vmem:[%s1385_s3 + $0x88] sm:$0xff] }
  0x31   :  { %915 = vmatmul.msk.bf16.vlgmr.msra.gmra.mxu2 %vm104_vm1, %v202_v33  ;;  %v365_v33 = vadd.s32 %v359_v19, %v355_v17  ;;  %v1072_v17 = vld [vmem:[%s1385_s3 + $0x60] sm:$0xff] }
  0x32   :  { %v417_v5 = vshll.u32 %v1281_v55, 16  ;;  %v419_v19 = vshll.u32 %v1296_v3, 16 }
  0x33   :  { %vm367_vm8 = vc.u32 %v365_v33, %v361_v31  ;;  %696 = vmatpush.bf16.msrb.mxu0 %v1061_v46  ;;  %789 = vmatpush.bf16.msrb.mxu1 %v1080_v11  ;;  %v391_v31 = vshrl.u32 %v1260_v36, 16  ;;  %v1078_v33 = vld [vmem:[%s1385_s3 + $0x90] sm:$0xff]  ;;  %v1330_v36 = vld [vmem:[%s1384_s2] ss:$0 sm:$0xff]  ;;  %v418_v46 = vshrl.u32 %v1281_v55, 16 }
  0x34   :  { %v368_v62 = vsel %vm367_vm8, 1, %v1095_v61  ;;  %vm421_vm11 = vc.u32 %v413_v2, %v417_v5  ;;  %v423_v9 = vadd.s32 %v417_v5, %v413_v2 }
  0x35   :  { %v370_v10 = vadd.s32 %v368_v62, %v366_v57  ;;  %v422_v30 = vsel %vm421_vm11, 1, %v1095_v61  ;;  %v420_v57 = vshrl.u32 %v1296_v3, 16 }
  0x36   :  { %vm425_vm12 = vc.u32 %v423_v9, %v419_v19 }
  0x37   :  { %697 = vmatpush.bf16.msrb.mxu0 %v1060_v63  ;;  %v371_v24 = vadd.s32 %v370_v10, %v360_v8  ;;  %790 = vmatpush.bf16.msrb.mxu1 %v1079_v27  ;;  %v1068_v63 = vld [vmem:[%s1385_s3 + $0x40] sm:$0xff] }
  0x39   :  { %v372_v28 = vadd.s32 %v371_v24, %v362_v22 }
  0x3b   :  { %791 = vmatpush.bf16.msrb.mxu1 %v1078_v33 }
  0x3f   :  { %792 = vmatpush.bf16.msrb.mxu1 %v1077_v48 }
  0x41   :  { %916 = vmatmul.msk.bf16.gmra.mxu2 %vm104_vm1, %v204_v35  ;;  %v384_v35 = vmul.u32 52429, %v381_v21  ;;  %v345_v21 = vmul.u32 20, %v344_v7 }
  0x43   :  { %vm392_vm9 = vc.u32 %v384_v35, %v388_v37  ;;  %v394_v51 = vadd.s32 %v388_v37, %v384_v35  ;;  %v346_v18 = vsub.s32 %v1195_v44, %v345_v21  ;;  %v426_v37 = vsel %vm425_vm12, 1, %v1095_v61 }
  0x44   :  { %v393_v0 = vsel %vm392_vm9, 1, %v1095_v61 }
  0x45   :  { %vm396_vm10 = vc.u32 %v394_v51, %v390_v50  ;;  %v395_v12 = vadd.s32 %v393_v0, %v387_v60  ;;  %vm442_vm3 = vcmp.lt.s32.totalorder %v346_v18, 0  ;;  %v456_v50 = vsel %vm446_vm15, %v451_v40, %v317_v20  ;;  %v1076_v60 = vld [vmem:[%s1385_s3 + $0x80] sm:$0xff] }
  0x46   :  { %v397_v14 = vsel %vm396_vm10, 1, %v1095_v61  ;;  %v373_v61 = vshrl.u32 %v372_v28, 4  ;;  %v452_v51 = vadd.s32 20, %v346_v18  ;;  %vm461_vm5 = vcmp.ge.s32.totalorder %v456_v50, 2  ;;  %793 = vmatpush.bf16.msrb.mxu1 %v1076_v60 }
  0x47   :  { %vm466_vm6 = vcmp.le.s32.totalorder %v456_v50, 17 }
  0x48   :  { %v374_v54 = vmul.u32 20, %v373_v61  ;;  %vm471_vm7 = vmand %vm461_vm5, %vm466_vm6 }
  0x4a   :  { %v375_v3 = vsub.s32 %v1214_v59, %v374_v54 }
  0x4c   :  { %vm438_vm11 = vcmp.ne.s32.totalorder %v375_v3, 0  ;;  %vm443_vm12 = vcmp.lt.s32.totalorder %v375_v3, 0  ;;  %v453_v19 = vadd.s32 20, %v375_v3 }
  0x4d   :  { %vm448_vm13 = vmand %vm443_vm12, %vm438_vm11 }
  0x51   :  { %917 = vmatmul.msk.bf16.gmra.mxu2 %vm104_vm1, %v203_v34  ;;  %v1075_v34 = vld [vmem:[%s1385_s3 + $0x78] sm:$0xff]  ;;  %vm437_vm1 = vcmp.ne.s32.totalorder %v346_v18, 0 }
  0x52   :  { %616 = vmatpush.bf16.msra.mxu3 %v1075_v34  ;;  %v424_v34 = vadd.s32 %v422_v30, %v416_v29  ;;  %vm447_vm4 = vmand %vm442_vm3, %vm437_vm1 }
  0x53   :  { %v457_v62 = vsel %vm447_vm4, %v452_v51, %v346_v18 }
  0x54   :  { %v428_v47 = vadd.s32 %v426_v37, %v424_v34  ;;  %vm462_vm8 = vcmp.ge.s32.totalorder %v457_v62, 2  ;;  %vm467_vm9 = vcmp.le.s32.totalorder %v457_v62, 17 }
  0x55   :  { %vm472_vm10 = vmand %vm462_vm8, %vm467_vm9 }
  0x56   :  { %617 = vmatpush.bf16.msra.mxu3 %v1074_v49  ;;  %v429_v58 = vadd.s32 %v428_v47, %v418_v46 }
  0x58   :  { %v430_v6 = vadd.s32 %v429_v58, %v420_v57 }
  0x5a   :  { %618 = vmatpush.bf16.msra.mxu3 %v1073_v1 }
  0x5e   :  { %619 = vmatpush.bf16.msra.mxu3 %v1072_v17 }
  0x62   :  { %620 = vmatpush.bf16.msra.mxu3 %v1071_v38 }
  0x66   :  { %621 = vmatpush.bf16.msra.mxu3 %v1070_v41 }
  0x6a   :  { %622 = vmatpush.bf16.msra.mxu3 %v1069_v52 }
  0x6e   :  { %623 = vmatpush.bf16.msra.mxu3 %v1068_v63 }
  0x8e   :  { %v123_v13 = vpop.f32.mrf.mxu0 }
  0x8f   :  { %v176_v16 = vpop.f32.mrf.mxu1 }
  0x90   :  { %v177_v35 = vadd.f32 %v176_v16, %v123_v13 }
  0x94   :  { %v1219_v4 = vpop.f32.mrf.mxu2 }
  0x96   :  { %v125_v44 = vpop.f32.mrf.mxu0 }
  0x97   :  { %v178_v42 = vpop.f32.mrf.mxu1 }
  0x98   :  { %v179_v0 = vadd.f32 %v178_v42, %v125_v44 }
  0x9c   :  { %v135_v26 = vpop.f32.mrf.mxu2 }
  0x9d   :  { %v399_v26 = vadd.s32 %v397_v14, %v395_v12  ;;  %v431_v14 = vshrl.u32 %v430_v6, 4 }
  0x9e   :  { %v128_v8 = vpop.f32.mrf.mxu0 }
  0x9f   :  { %v400_v32 = vadd.s32 %v399_v26, %v389_v25  ;;  %v181_v10 = vpop.f32.mrf.mxu1  ;;  %v432_v22 = vmul.u32 20, %v431_v14  ;;  %v458_v26 = vsel %vm448_vm13, %v453_v19, %v375_v3 }
  0xa0   :  { %v182_v16 = vadd.f32 %v181_v10, %v128_v8  ;;  %vm463_vm3 = vcmp.ge.s32.totalorder %v458_v26, 2  ;;  %vm468_vm4 = vcmp.le.s32.totalorder %v458_v26, 17 }
  0xa1   :  { %v401_v45 = vadd.s32 %v400_v32, %v391_v31  ;;  %v433_v18 = vsub.s32 %v1263_v39, %v432_v22  ;;  %vm473_vm5 = vmand %vm463_vm3, %vm468_vm4  ;;  %v1094_v22 = vld [vmem:[%s1386_s4] ss:$0 sm:$0xff] }
  0xa3   :  { %v402_v55 = vshrl.u32 %v401_v45, 4  ;;  %vm440_vm6 = vcmp.ne.s32.totalorder %v433_v18, 0 }
  0xa4   :  { %v1283_v56 = vpop.f32.mrf.mxu2 }
  0xa5   :  { %v403_v5 = vmul.u32 20, %v402_v55  ;;  %v187_v42 = vadd.f32 %v1283_v56, %v1219_v4 }
  0xa7   :  { %v404_v13 = vsub.s32 %v1231_v15, %v403_v5  ;;  %v130_v15 = vpop.f32.mrf.mxu0  ;;  %v183_v30 = vpop.f32.mrf.mxu1 }
  0xa8   :  { %v184_v31 = vadd.f32 %v183_v30, %v130_v15 }
  0xa9   :  { %vm439_vm14 = vcmp.ne.s32.totalorder %v404_v13, 0  ;;  %vm444_vm15 = vcmp.lt.s32.totalorder %v404_v13, 0  ;;  %v454_v27 = vadd.s32 20, %v404_v13 }
  0xaa   :  { %vm449_vm1 = vmand %vm444_vm15, %vm439_vm14 }
  0xab   :  { %v459_v28 = vsel %vm449_vm1, %v454_v27, %v404_v13 }
  0xac   :  { %v188_v23 = vpop.f32.mrf.mxu2  ;;  %vm464_vm8 = vcmp.ge.s32.totalorder %v459_v28, 2  ;;  %vm469_vm9 = vcmp.le.s32.totalorder %v459_v28, 17 }
  0xad   :  { %vm474_vm11 = vmand %vm464_vm8, %vm469_vm9 }
  0xb4   :  { %v247_v43 = vpop.f32.mrf.mxu2 }
  0xb5   :  { %v261_v49 = vadd.f32 %v247_v43, %v177_v35  ;;  %v455_v35 = vadd.s32 20, %v433_v18 }
  0xb7   :  { %v270_v53 = vadd.f32 %v1330_v36, %v261_v49 }
  0xb9   :  { %v275_v1 = vmax.f32 %v270_v53, 0.0 }
  0xbb   :  { %v486_v11 = vsel %vm471_vm7, %v275_v1, 0.0  ;;  %vm445_vm7 = vcmp.lt.s32.totalorder %v433_v18, 0 }
  0xbc   :  { %v249_v2 = vpop.f32.mrf.mxu2  ;;  %v491_v59 = vpack.c.bf16 %v486_v11, %v486_v11 }
  0xbd   :  { %v262_v7 = vadd.f32 %v249_v2, %v179_v0 }
  0xbe   :  { %v534_v24 = vunpack.c.l.b16 %v491_v59 }
  0xbf   :  { %v271_v12 = vadd.f32 %v1330_v36, %v262_v7 }
  0xc1   :  { %v276_v17 = vmax.f32 %v271_v12, 0.0 }
  0xc3   :  { %v487_v9 = vsel %vm472_vm10, %v276_v17, 0.0  ;;  %vm450_vm10 = vmand %vm445_vm7, %vm440_vm6 }
  0xc4   :  { %v492_v20 = vpack.c.bf16 %v487_v9, %v487_v9  ;;  %v252_v21 = vpop.f32.mrf.mxu2  ;;  %v460_v44 = vsel %vm450_vm10, %v455_v35, %v433_v18 }
  0xc5   :  { %v263_v23 = vadd.f32 %v252_v21, %v182_v16  ;;  %vm465_vm12 = vcmp.ge.s32.totalorder %v460_v44, 2  ;;  %vm470_vm13 = vcmp.le.s32.totalorder %v460_v44, 17 }
  0xc6   :  { %v535_v25 = vunpack.c.l.b16 %v492_v20  ;;  %vm475_vm14 = vmand %vm465_vm12, %vm470_vm13 }
  0xc7   :  { %v272_v29 = vadd.f32 %v1330_v36, %v263_v23 }
  0xc8   :  { %v539_v38 = vpack.c.b16 %v535_v25, %v534_v24 }
  0xc9   :  { %v277_v32 = vmax.f32 %v272_v29, 0.0 }
  0xca   :  { %698 = vmatmul.bf16.vlgmr.msrb.gmra.mxu0 %v539_v38  ;;  %v545_v46 = vshll.u32 %v539_v38, 16  ;;  %v730_v54 = vrot.slane %v539_v38, 1  ;;  %v543_v57 = vshrl.u32 %v539_v38, 16 }
  0xcb   :  { %v488_v37 = vsel %vm473_vm5, %v277_v32, 0.0 }
  0xcc   :  { %v254_v33 = vpop.f32.mrf.mxu2  ;;  %v493_v41 = vpack.c.bf16 %v488_v37, %v488_v37  ;;  %v547_v52 = vrot.slane %v545_v46, 1 }
  0xcd   :  { %v264_v34 = vadd.f32 %v254_v33, %v184_v31 }
  0xce   :  { %v536_v48 = vunpack.c.l.b16 %v493_v41  ;;  %v548_v63 = vor.u32 %v547_v52, %v543_v57 }
  0xcf   :  { %v273_v40 = vadd.f32 %v1330_v36, %v264_v34 }
  0xd1   :  { %v278_v39 = vmax.f32 %v273_v40, 0.0 }
  0xd3   :  { %v489_v43 = vsel %vm474_vm11, %v278_v39, 0.0 }
  0xd4   :  { %v494_v61 = vpack.c.bf16 %v489_v43, %v489_v43  ;;  %v257_v45 = vpop.f32.mrf.mxu2 }
  0xd5   :  { %v265_v47 = vadd.f32 %v257_v45, %v187_v42 }
  0xd6   :  { %v537_v49 = vunpack.c.l.b16 %v494_v61 }
  0xd7   :  { %v274_v50 = vadd.f32 %v1330_v36, %v265_v47 }
  0xd8   :  { %v540_v51 = vpack.c.b16 %v537_v49, %v536_v48 }
  0xd9   :  { %v279_v53 = vmax.f32 %v274_v50, 0.0 }
  0xda   :  { %703 = vmatmul.bf16.gmra.mxu0 %v540_v51  ;;  %v731_v55 = vrot.slane %v540_v51, 1  ;;  %v550_v4 = vshll.u32 %v540_v51, 16  ;;  %v554_v6 = vshrl.u32 %v540_v51, 16 }
  0xdb   :  { %v490_v56 = vsel %vm475_vm14, %v279_v53, 0.0 }
  0xdc   :  { %v495_v58 = vpack.c.bf16 %v490_v56, %v490_v56  ;;  %v259_v60 = vpop.f32.mrf.mxu2  ;;  %v732_v62 = vsel %vm199_vm2, %v730_v54, %v731_v55  ;;  %v552_v0 = vrot.slane %v550_v4, 1 }
  0xdd   :  { %794 = vmatmul.bf16.vlgmr.msrb.gmra.mxu1 %v732_v62 }
  0xde   :  { %v538_v1 = vunpack.c.l.b16 %v495_v58  ;;  %v553_v36 = vsel %vm56_vm0, %v548_v63, %v552_v0  ;;  %v556_v10 = vor.u32 %v554_v6, %v552_v0 }
  0xdf   :  { %624 = vmatmul.bf16.vlgmr.msra.gmra.mxu3 %v553_v36 }
  0xe0   :  { %v541_v2 = vpack.c.b16 %v538_v1, %v538_v1 }
  0xe2   :  { %v558_v3 = vshll.u32 %v541_v2, 16  ;;  %v733_v5 = vrot.slane %v541_v2, 1  ;;  %v562_v12 = vshrl.u32 %v541_v2, 16 }
  0xe4   :  { %v560_v7 = vrot.slane %v558_v3, 1  ;;  %v734_v8 = vsel %vm199_vm2, %v731_v55, %v733_v5 }
  0xe6   :  { %v561_v11 = vsel %vm56_vm0, %v556_v10, %v560_v7  ;;  %v564_v13 = vor.u32 %v562_v12, %v560_v7 }
  0xea   :  { %708 = vmatmul.bf16.gmra.mxu0 %v541_v2 }
  0xed   :  { %799 = vmatmul.bf16.gmra.mxu1 %v734_v8 }
  0xef   :  { %629 = vmatmul.bf16.gmra.mxu3 %v561_v11 }
  0xfd   :  { %804 = vmatmul.bf16.gmra.mxu1 %v733_v5 }
  0xff   :  { %634 = vmatmul.bf16.gmra.mxu3 %v564_v13 }
 0x147   :  { %v699_v14 = vpop.f32.mrf.mxu0 }
 0x14f   :  { %v701_v16 = vpop.f32.mrf.mxu0 }
 0x157   :  { %v704_v17 = vpop.f32.mrf.mxu0 }
 0x15a   :  { %v795_v59 = vpop.f32.mrf.mxu1 }
 0x15f   :  { %v706_v19 = vpop.f32.mrf.mxu0 }
 0x162   :  { %v625_v9 = vpop.f32.mrf.mxu3  ;;  %v797_v20 = vpop.f32.mrf.mxu1 }
 0x163   :  { %v700_v21 = vadd.f32 %v699_v14, %v625_v9 }
 0x165   :  { %v809_v23 = vadd.f32 %v795_v59, %v700_v21 }
 0x167   :  { %v818_v24 = vadd.f32 %v1094_v22, %v809_v23  ;;  %v709_v25 = vpop.f32.mrf.mxu0 }
 0x169   :  { %v823_v26 = vmax.f32 %v818_v24, 0.0 }
 0x16a   :  { %v627_v27 = vpop.f32.mrf.mxu3  ;;  %v800_v29 = vpop.f32.mrf.mxu1 }
 0x16b   :  { %828 = vst [vmem:[%s1387_s5] sm:$0xff] %v823_v26  ;;  %v702_v15 = vadd.f32 %v701_v16, %v627_v27 }
 0x16d   :  { %v810_v30 = vadd.f32 %v797_v20, %v702_v15 }
 0x16f   :  { %v819_v38 = vadd.f32 %v1094_v22, %v810_v30  ;;  %v711_v18 = vpop.f32.mrf.mxu0 }
 0x171   :  { %v824_v28 = vmax.f32 %v819_v38, 0.0 }
 0x172   :  { %v630_v31 = vpop.f32.mrf.mxu3  ;;  %v802_v32 = vpop.f32.mrf.mxu1 }
 0x173   :  { %829 = vst [vmem:[%s1387_s5 + $0x8] sm:$0xff] %v824_v28  ;;  %v705_v33 = vadd.f32 %v704_v17, %v630_v31 }
 0x175   :  { %v811_v34 = vadd.f32 %v800_v29, %v705_v33 }
 0x177   :  { %v820_v35 = vadd.f32 %v1094_v22, %v811_v34 }
 0x179   :  { %v825_v37 = vmax.f32 %v820_v35, 0.0 }
 0x17a   :  { %v632_v40 = vpop.f32.mrf.mxu3  ;;  %v805_v39 = vpop.f32.mrf.mxu1 }
 0x17b   :  { %830 = vst [vmem:[%s1387_s5 + $0xc] sm:$0xf0] %v825_v37  ;;  %v707_v41 = vadd.f32 %v706_v19, %v632_v40 }
 0x17d   :  { %v812_v44 = vadd.f32 %v802_v32, %v707_v41 }
 0x17f   :  { %v821_v42 = vadd.f32 %v1094_v22, %v812_v44 }
 0x181   :  { %v826_v43 = vmax.f32 %v821_v42, 0.0 }
 0x182   :  { %v635_v61 = vpop.f32.mrf.mxu3  ;;  %v807_v45 = vpop.f32.mrf.mxu1 }
 0x183   :  { %831 = vst [vmem:[%s1387_s5 + $0x14] sm:$0xff] %v826_v43  ;;  %v710_v46 = vadd.f32 %v709_v25, %v635_v61 }
 0x185   :  { %v813_v47 = vadd.f32 %v805_v39, %v710_v46 }
 0x187   :  { %v822_v48 = vadd.f32 %v1094_v22, %v813_v47 }
 0x189   :  { %v827_v49 = vmax.f32 %v822_v48, 0.0 }
 0x18a   :  { %v637_v50 = vpop.f32.mrf.mxu3 }
 0x18b   :  { %832 = vst [vmem:[%s1387_s5 + $0x1c] sm:$0xf] %v827_v49 }

</bundles_post_ra>
